<compile_context>
chip_gen: v7x
topology: tpu7x:2x2x1
jax: 0.10.0
libtpu: 0.0.40
codegen_flags: <defaults>
</compile_context>

<pallas_src>
import jax
import jax.numpy as jnp
from jax.experimental import pallas as pl
from jax.experimental.pallas import tpu as pltpu


def make_lstm_ffn_kernel(T, B):
    """Single-invocation kernel: full LSTM recurrence + FFN head.

    Ref layout (all VMEM-resident, f32):
      x_ref  : (T*B, D_in)   time-major input, flattened over (T, B)
      wih_ref: (D_in, 4H)    input->gates weight (pre-transposed)
      whh_ref: (H, 4H)       hidden->gates weight (pre-transposed)
      b_ref  : (1, 4H)       b_ih + b_hh
      w1_ref : (H, H1)       first FFN linear (pre-transposed)
      b1_ref : (1, H1)
      w2_ref : (H1, OUT)     final linear (pre-transposed)
      b2_ref : (1, OUT)
      out_ref: (B, OUT)
    """

    def kernel(x_ref, wih_ref, whh_ref, b_ref,
               w1_ref, b1_ref, w2_ref, b2_ref, out_ref):
        H = whh_ref.shape[0]
        D = x_ref.shape[1]
        whh = whh_ref[...]
        wih = wih_ref[...]
        x = x_ref[...]

        # (R4) Hoisted input projection on the VPU: D = 3 broadcast FMAs over
        # the whole (T*B, 4H) slab; no MXU pass for K=3.
        gx = b_ref[...] + x[:, 0:1] * wih[0:1, :]             # (T*B, 4H)
        for k in range(1, D):                                  # D is static (=3)
            gx = gx + x[:, k:k + 1] * wih[k:k + 1, :]

        # (R2) Hoisted per-lane constants for the single-tanh gate activation.
        # PyTorch packed gate order along the 4H lanes: i, f, g, o.
        # g-lanes: tanh(x); other lanes: sigmoid(x) = 0.5*tanh(x/2) + 0.5.
        lane = jax.lax.broadcasted_iota(jnp.int32, (B, 4 * H), 1)
        is_g = (lane >= 2 * H) & (lane < 3 * H)
        pre_scale = jnp.where(is_g, 1.0, 0.5)                  # x    vs x/2
        post_scale = jnp.where(is_g, 1.0, 0.5)                 # t    vs 0.5*t
        post_bias = jnp.where(is_g, 0.0, 0.5)                  # +0   vs +0.5

        h = jnp.zeros((B, H), jnp.float32)
        c = jnp.zeros((B, H), jnp.float32)

        # Fully unrolled recurrence (T is a compile-time constant) so the LLO
        # scheduler can co-issue MXU/EUP/VPU work across adjacent steps.
        # TODO(synk): pin whh in MXU weight registers (matmul_push_rhs) instead
        # of re-streaming it in every jnp.dot.
        for t in range(T):
            gates = (gx[t * B:(t + 1) * B, :]
                     + jnp.dot(h, whh, preferred_element_type=jnp.float32))
            # (R2) ONE full-width transcendental per step on the packed gates.
            th = jnp.tanh(gates * pre_scale)
            act = th * post_scale + post_bias
            # TODO(synk): switch to explicit pltpu.roll(act, k*H, 1) extraction
            # if a bundle dump shows vsel/vrot on the serial chain here.
            i = act[:, 0 * H:1 * H]
            f = act[:, 1 * H:2 * H]
            g = act[:, 2 * H:3 * H]
            o = act[:, 3 * H:4 * H]
            c = f * c + i * g
            h = o * jnp.tanh(c)

        # dropout(lstm_out[:, -1, :]) -> identity in eval mode.
        z = (jnp.dot(h, w1_ref[...], preferred_element_type=jnp.float32)
             + b1_ref[...])
        z = jnp.maximum(z, 0.0)                                # ReLU (+ identity dropout)
        out_ref[...] = (jnp.dot(z, w2_ref[...],
                                preferred_element_type=jnp.float32)
                        + b2_ref[...])

    return kernel


def init_params(key, input_size=3, hidden_layers=(32, 32), out_features=9):
    """Deterministic synthetic parameters matching PyTorch LSTMModel shapes."""
    H = hidden_layers[0]
    ks = jax.random.split(key, 8)
    s_lstm = 1.0 / (H ** 0.5)

    w_ih = jax.random.uniform(ks[0], (4 * H, input_size), jnp.float32, -s_lstm, s_lstm)
    w_hh = jax.random.uniform(ks[1], (4 * H, H), jnp.float32, -s_lstm, s_lstm)
    b_ih = jax.random.uniform(ks[2], (4 * H,), jnp.float32, -s_lstm, s_lstm)
    b_hh = jax.random.uniform(ks[3], (4 * H,), jnp.float32, -s_lstm, s_lstm)

    h1 = hidden_layers[1]
    s1 = 1.0 / (H ** 0.5)
    w1 = jax.random.uniform(ks[4], (h1, H), jnp.float32, -s1, s1)
    b1 = jax.random.uniform(ks[5], (h1,), jnp.float32, -s1, s1)
    s2 = 1.0 / (h1 ** 0.5)
    w2 = jax.random.uniform(ks[6], (out_features, h1), jnp.float32, -s2, s2)
    b2 = jax.random.uniform(ks[7], (out_features,), jnp.float32, -s2, s2)

    return dict(w_ih=w_ih, w_hh=w_hh, b_ih=b_ih, b_hh=b_hh,
                w1=w1, b1=b1, w2=w2, b2=b2)


def prepare_params(params):
    """(R1) One-time weight prep: pre-transpose / pre-fuse all constants so the
    jitted forward pays zero per-call weight massaging."""
    H = params["w_hh"].shape[1]
    return dict(
        wih_t=jnp.asarray(params["w_ih"].T),                        # (D, 4H)
        whh_t=jnp.asarray(params["w_hh"].T),                        # (H, 4H)
        b=(params["b_ih"] + params["b_hh"]).reshape(1, 4 * H),      # (1, 4H)
        w1_t=jnp.asarray(params["w1"].T),                           # (H, H1)
        b1=params["b1"].reshape(1, -1),                             # (1, H1)
        w2_t=jnp.asarray(params["w2"].T),                           # (H1, OUT)
        b2=params["b2"].reshape(1, -1),                             # (1, OUT)
    )


@jax.jit
def lstm_model_forward(x, kp):
    """x: (B, T, 3) batch_first f32.  kp: prepare_params(...) output.
    Returns (B, out_features) f32.  Padding, layout glue and the pallas_call
    are all fused into one jitted XLA computation (R1)."""
    B, T, D = x.shape
    H = kp["whh_t"].shape[0]
    H1 = kp["w1_t"].shape[1]
    OUT = kp["w2_t"].shape[1]

    # Pad batch to the f32 sublane height (8): same tiles on-chip, and the
    # per-step gate slices gx[t*B:(t+1)*B] become exact (8, 4H) tiles.
    B_pad = max(8, ((B + 7) // 8) * 8)
    x_p = jnp.zeros((B_pad, T, D), jnp.float32).at[:B].set(x.astype(jnp.float32))
    # Time-major, flattened over (T, B): each timestep is a contiguous,
    # sublane-aligned row block.
    x_tm = jnp.transpose(x_p, (1, 0, 2)).reshape(T * B_pad, D)

    # Advisory cost estimate for the outer XLA scheduler.
    flops = (2 * T * B_pad * D * 4 * H            # input projection (VPU FMAs)
             + 2 * T * B_pad * H * 4 * H          # recurrence h @ Whh
             + 2 * B_pad * (H * H1 + H1 * OUT))   # FFN head
    transcendentals = T * B_pad * (4 * H + H)     # one packed tanh + tanh(c) per step
    bytes_accessed = 4 * (x_tm.size + kp["wih_t"].size + kp["whh_t"].size
                          + kp["b"].size + kp["w1_t"].size + kp["b1"].size
                          + kp["w2_t"].size + kp["b2"].size + B_pad * OUT)

    vmem = pl.BlockSpec(memory_space=pltpu.MemorySpace.VMEM)
    out = pl.pallas_call(
        make_lstm_ffn_kernel(T, B_pad),
        out_shape=jax.ShapeDtypeStruct((B_pad, OUT), jnp.float32),
        in_specs=[vmem] * 8,
        out_specs=vmem,
        cost_estimate=pl.CostEstimate(flops=flops,
                                      transcendentals=transcendentals,
                                      bytes_accessed=bytes_accessed),
    )(x_tm, kp["wih_t"], kp["whh_t"], kp["b"], kp["w1_t"], kp["b1"],
      kp["w2_t"], kp["b2"])
    return out[:B]


def lstm_model_reference(x, params):
    """Pure-JAX reference mirroring the PyTorch module (eval mode)."""
    B, T, D = x.shape
    H = params["w_hh"].shape[1]
    b = params["b_ih"] + params["b_hh"]
    h = jnp.zeros((B, H), jnp.float32)
    c = jnp.zeros((B, H), jnp.float32)
    for t in range(T):
        gates = x[:, t, :] @ params["w_ih"].T + h @ params["w_hh"].T + b
        i, f, g, o = jnp.split(gates, 4, axis=1)
        i = jax.nn.sigmoid(i)
        f = jax.nn.sigmoid(f)
        g = jnp.tanh(g)
        o = jax.nn.sigmoid(o)
        c = f * c + i * g
        h = o * jnp.tanh(c)
    z = jnp.maximum(h @ params["w1"].T + params["b1"], 0.0)
    return z @ params["w2"].T + params["b2"]


if __name__ == "__main__":
    key = jax.random.PRNGKey(0)
    k_param, k_x = jax.random.split(key)

    hidden_layers = (32, 32)
    params = init_params(k_param, input_size=3, hidden_layers=hidden_layers,
                         out_features=9)
    kparams = prepare_params(params)          # (R1) one-time weight prep

    B, T, D = 2, 8, 3
    x = jax.random.normal(k_x, (B, T, D), dtype=jnp.float32)

    out = lstm_model_forward(x, kparams)
    jax.block_until_ready(out)
    assert out.shape == (B, 9), out.shape

    # Pure-JAX reference check. Loose tolerance: f32 matmuls may take bf16 MXU
    # passes on either side; real bugs (wrong gate order / shifts) would be
    # O(0.1+) and still caught.
    ref = lstm_model_reference(x, params)
    err = float(jnp.max(jnp.abs(out - ref)))
    assert err < 2e-2, f"kernel deviates from reference: max abs err {err}"

    print("KERNEL_OK")
</pallas_src>

<mosaic_0001>
module attributes {stable_mosaic.version = 11 : i64} {
  func.func @kernel(%arg0: memref<64x3xf32, #tpu.memory_space<vmem>>, %arg1: memref<3x128xf32, #tpu.memory_space<vmem>>, %arg2: memref<32x128xf32, #tpu.memory_space<vmem>>, %arg3: memref<1x128xf32, #tpu.memory_space<vmem>>, %arg4: memref<32x32xf32, #tpu.memory_space<vmem>>, %arg5: memref<1x32xf32, #tpu.memory_space<vmem>>, %arg6: memref<32x9xf32, #tpu.memory_space<vmem>>, %arg7: memref<1x9xf32, #tpu.memory_space<vmem>>, %arg8: memref<8x9xf32, #tpu.memory_space<vmem>>) attributes {dimension_semantics = [], scalar_prefetch = 0 : i64, scratch_operands = 0 : i64, tpu.core_type = #tpu.core_type<tc>} {
    %c0 = arith.constant 0 : index
    %c0_0 = arith.constant 0 : index
    %0 = vector.load %arg2[%c0, %c0_0] : memref<32x128xf32, #tpu.memory_space<vmem>>, vector<32x128xf32>
    %c0_1 = arith.constant 0 : index
    %c0_2 = arith.constant 0 : index
    %1 = vector.load %arg1[%c0_1, %c0_2] : memref<3x128xf32, #tpu.memory_space<vmem>>, vector<3x128xf32>
    %c0_3 = arith.constant 0 : index
    %c0_4 = arith.constant 0 : index
    %2 = vector.load %arg0[%c0_3, %c0_4] : memref<64x3xf32, #tpu.memory_space<vmem>>, vector<64x3xf32>
    %c0_5 = arith.constant 0 : index
    %c0_6 = arith.constant 0 : index
    %3 = vector.load %arg3[%c0_5, %c0_6] : memref<1x128xf32, #tpu.memory_space<vmem>>, vector<1x128xf32>
    %4 = vector.extract_strided_slice %2 {offsets = [0, 0], sizes = [64, 1], strides = [1, 1]} : vector<64x3xf32> to vector<64x1xf32>
    %5 = vector.extract_strided_slice %1 {offsets = [0, 0], sizes = [1, 128], strides = [1, 1]} : vector<3x128xf32> to vector<1x128xf32>
    %6 = vector.broadcast %4 : vector<64x1xf32> to vector<64x128xf32>
    %7 = vector.broadcast %5 : vector<1x128xf32> to vector<64x128xf32>
    %8 = arith.mulf %6, %7 : vector<64x128xf32>
    %9 = vector.broadcast %3 : vector<1x128xf32> to vector<64x128xf32>
    %10 = arith.addf %9, %8 : vector<64x128xf32>
    %11 = vector.extract_strided_slice %2 {offsets = [0, 1], sizes = [64, 1], strides = [1, 1]} : vector<64x3xf32> to vector<64x1xf32>
    %12 = vector.extract_strided_slice %1 {offsets = [1, 0], sizes = [1, 128], strides = [1, 1]} : vector<3x128xf32> to vector<1x128xf32>
    %13 = vector.broadcast %11 : vector<64x1xf32> to vector<64x128xf32>
    %14 = vector.broadcast %12 : vector<1x128xf32> to vector<64x128xf32>
    %15 = arith.mulf %13, %14 : vector<64x128xf32>
    %16 = arith.addf %10, %15 : vector<64x128xf32>
    %17 = vector.extract_strided_slice %2 {offsets = [0, 2], sizes = [64, 1], strides = [1, 1]} : vector<64x3xf32> to vector<64x1xf32>
    %18 = vector.extract_strided_slice %1 {offsets = [2, 0], sizes = [1, 128], strides = [1, 1]} : vector<3x128xf32> to vector<1x128xf32>
    %19 = vector.broadcast %17 : vector<64x1xf32> to vector<64x128xf32>
    %20 = vector.broadcast %18 : vector<1x128xf32> to vector<64x128xf32>
    %21 = arith.mulf %19, %20 : vector<64x128xf32>
    %22 = arith.addf %16, %21 : vector<64x128xf32>
    %23 = tpu.iota {dimensions = array<i32: 1>} : vector<8x128xi32>
    %c64_i32 = arith.constant 64 : i32
    %24 = vector.broadcast %c64_i32 : i32 to vector<8x128xi32>
    %25 = arith.cmpi sge, %23, %24 : vector<8x128xi32>
    %c96_i32 = arith.constant 96 : i32
    %26 = vector.broadcast %c96_i32 : i32 to vector<8x128xi32>
    %27 = arith.cmpi slt, %23, %26 : vector<8x128xi32>
    %28 = arith.andi %25, %27 : vector<8x128xi1>
    %cst = arith.constant 1.000000e+00 : f32
    %cst_7 = arith.constant 5.000000e-01 : f32
    %29 = vector.broadcast %cst : f32 to vector<8x128xf32>
    %30 = vector.broadcast %cst_7 : f32 to vector<8x128xf32>
    %31 = arith.select %28, %29, %30 : vector<8x128xi1>, vector<8x128xf32>
    %cst_8 = arith.constant 1.000000e+00 : f32
    %cst_9 = arith.constant 5.000000e-01 : f32
    %32 = vector.broadcast %cst_8 : f32 to vector<8x128xf32>
    %33 = vector.broadcast %cst_9 : f32 to vector<8x128xf32>
    %34 = arith.select %28, %32, %33 : vector<8x128xi1>, vector<8x128xf32>
    %cst_10 = arith.constant 0.000000e+00 : f32
    %cst_11 = arith.constant 5.000000e-01 : f32
    %35 = vector.broadcast %cst_10 : f32 to vector<8x128xf32>
    %36 = vector.broadcast %cst_11 : f32 to vector<8x128xf32>
    %37 = arith.select %28, %35, %36 : vector<8x128xi1>, vector<8x128xf32>
    %cst_12 = arith.constant 0.000000e+00 : f32
    %38 = vector.broadcast %cst_12 : f32 to vector<8x32xf32>
    %cst_13 = arith.constant 0.000000e+00 : f32
    %39 = vector.broadcast %cst_13 : f32 to vector<8x32xf32>
    %40 = vector.extract_strided_slice %22 {offsets = [0, 0], sizes = [8, 128], strides = [1, 1]} : vector<64x128xf32> to vector<8x128xf32>
    %cst_14 = arith.constant dense<0.000000e+00> : vector<8x128xf32>
    %41 = tpu.matmul %38, %0, %cst_14 {dimension_numbers = #tpu.dot_dimension_numbers<[1], [0], [0], [1], [0, 0, 1, 1], [], []>} : vector<8x32xf32>, vector<32x128xf32>, vector<8x128xf32> -> vector<8x128xf32>
    %42 = arith.addf %40, %41 : vector<8x128xf32>
    %43 = arith.mulf %42, %31 : vector<8x128xf32>
    %44 = math.tanh %43 : vector<8x128xf32>
    %45 = arith.mulf %44, %34 : vector<8x128xf32>
    %46 = arith.addf %45, %37 : vector<8x128xf32>
    %47 = vector.extract_strided_slice %46 {offsets = [0, 0], sizes = [8, 32], strides = [1, 1]} : vector<8x128xf32> to vector<8x32xf32>
    %48 = vector.extract_strided_slice %46 {offsets = [0, 32], sizes = [8, 32], strides = [1, 1]} : vector<8x128xf32> to vector<8x32xf32>
    %49 = vector.extract_strided_slice %46 {offsets = [0, 64], sizes = [8, 32], strides = [1, 1]} : vector<8x128xf32> to vector<8x32xf32>
    %50 = vector.extract_strided_slice %46 {offsets = [0, 96], sizes = [8, 32], strides = [1, 1]} : vector<8x128xf32> to vector<8x32xf32>
    %51 = arith.mulf %48, %39 : vector<8x32xf32>
    %52 = arith.mulf %47, %49 : vector<8x32xf32>
    %53 = arith.addf %51, %52 : vector<8x32xf32>
    %54 = math.tanh %53 : vector<8x32xf32>
    %55 = arith.mulf %50, %54 : vector<8x32xf32>
    %56 = vector.extract_strided_slice %22 {offsets = [8, 0], sizes = [8, 128], strides = [1, 1]} : vector<64x128xf32> to vector<8x128xf32>
    %cst_15 = arith.constant dense<0.000000e+00> : vector<8x128xf32>
    %57 = tpu.matmul %55, %0, %cst_15 {dimension_numbers = #tpu.dot_dimension_numbers<[1], [0], [0], [1], [0, 0, 1, 1], [], []>} : vector<8x32xf32>, vector<32x128xf32>, vector<8x128xf32> -> vector<8x128xf32>
    %58 = arith.addf %56, %57 : vector<8x128xf32>
    %59 = arith.mulf %58, %31 : vector<8x128xf32>
    %60 = math.tanh %59 : vector<8x128xf32>
    %61 = arith.mulf %60, %34 : vector<8x128xf32>
    %62 = arith.addf %61, %37 : vector<8x128xf32>
    %63 = vector.extract_strided_slice %62 {offsets = [0, 0], sizes = [8, 32], strides = [1, 1]} : vector<8x128xf32> to vector<8x32xf32>
    %64 = vector.extract_strided_slice %62 {offsets = [0, 32], sizes = [8, 32], strides = [1, 1]} : vector<8x128xf32> to vector<8x32xf32>
    %65 = vector.extract_strided_slice %62 {offsets = [0, 64], sizes = [8, 32], strides = [1, 1]} : vector<8x128xf32> to vector<8x32xf32>
    %66 = vector.extract_strided_slice %62 {offsets = [0, 96], sizes = [8, 32], strides = [1, 1]} : vector<8x128xf32> to vector<8x32xf32>
    %67 = arith.mulf %64, %53 : vector<8x32xf32>
    %68 = arith.mulf %63, %65 : vector<8x32xf32>
    %69 = arith.addf %67, %68 : vector<8x32xf32>
    %70 = math.tanh %69 : vector<8x32xf32>
    %71 = arith.mulf %66, %70 : vector<8x32xf32>
    %72 = vector.extract_strided_slice %22 {offsets = [16, 0], sizes = [8, 128], strides = [1, 1]} : vector<64x128xf32> to vector<8x128xf32>
    %cst_16 = arith.constant dense<0.000000e+00> : vector<8x128xf32>
    %73 = tpu.matmul %71, %0, %cst_16 {dimension_numbers = #tpu.dot_dimension_numbers<[1], [0], [0], [1], [0, 0, 1, 1], [], []>} : vector<8x32xf32>, vector<32x128xf32>, vector<8x128xf32> -> vector<8x128xf32>
    %74 = arith.addf %72, %73 : vector<8x128xf32>
    %75 = arith.mulf %74, %31 : vector<8x128xf32>
    %76 = math.tanh %75 : vector<8x128xf32>
    %77 = arith.mulf %76, %34 : vector<8x128xf32>
    %78 = arith.addf %77, %37 : vector<8x128xf32>
    %79 = vector.extract_strided_slice %78 {offsets = [0, 0], sizes = [8, 32], strides = [1, 1]} : vector<8x128xf32> to vector<8x32xf32>
    %80 = vector.extract_strided_slice %78 {offsets = [0, 32], sizes = [8, 32], strides = [1, 1]} : vector<8x128xf32> to vector<8x32xf32>
    %81 = vector.extract_strided_slice %78 {offsets = [0, 64], sizes = [8, 32], strides = [1, 1]} : vector<8x128xf32> to vector<8x32xf32>
    %82 = vector.extract_strided_slice %78 {offsets = [0, 96], sizes = [8, 32], strides = [1, 1]} : vector<8x128xf32> to vector<8x32xf32>
    %83 = arith.mulf %80, %69 : vector<8x32xf32>
    %84 = arith.mulf %79, %81 : vector<8x32xf32>
    %85 = arith.addf %83, %84 : vector<8x32xf32>
    %86 = math.tanh %85 : vector<8x32xf32>
    %87 = arith.mulf %82, %86 : vector<8x32xf32>
    %88 = vector.extract_strided_slice %22 {offsets = [24, 0], sizes = [8, 128], strides = [1, 1]} : vector<64x128xf32> to vector<8x128xf32>
    %cst_17 = arith.constant dense<0.000000e+00> : vector<8x128xf32>
    %89 = tpu.matmul %87, %0, %cst_17 {dimension_numbers = #tpu.dot_dimension_numbers<[1], [0], [0], [1], [0, 0, 1, 1], [], []>} : vector<8x32xf32>, vector<32x128xf32>, vector<8x128xf32> -> vector<8x128xf32>
    %90 = arith.addf %88, %89 : vector<8x128xf32>
    %91 = arith.mulf %90, %31 : vector<8x128xf32>
    %92 = math.tanh %91 : vector<8x128xf32>
    %93 = arith.mulf %92, %34 : vector<8x128xf32>
    %94 = arith.addf %93, %37 : vector<8x128xf32>
    %95 = vector.extract_strided_slice %94 {offsets = [0, 0], sizes = [8, 32], strides = [1, 1]} : vector<8x128xf32> to vector<8x32xf32>
    %96 = vector.extract_strided_slice %94 {offsets = [0, 32], sizes = [8, 32], strides = [1, 1]} : vector<8x128xf32> to vector<8x32xf32>
    %97 = vector.extract_strided_slice %94 {offsets = [0, 64], sizes = [8, 32], strides = [1, 1]} : vector<8x128xf32> to vector<8x32xf32>
    %98 = vector.extract_strided_slice %94 {offsets = [0, 96], sizes = [8, 32], strides = [1, 1]} : vector<8x128xf32> to vector<8x32xf32>
    %99 = arith.mulf %96, %85 : vector<8x32xf32>
    %100 = arith.mulf %95, %97 : vector<8x32xf32>
    %101 = arith.addf %99, %100 : vector<8x32xf32>
    %102 = math.tanh %101 : vector<8x32xf32>
    %103 = arith.mulf %98, %102 : vector<8x32xf32>
    %104 = vector.extract_strided_slice %22 {offsets = [32, 0], sizes = [8, 128], strides = [1, 1]} : vector<64x128xf32> to vector<8x128xf32>
    %cst_18 = arith.constant dense<0.000000e+00> : vector<8x128xf32>
    %105 = tpu.matmul %103, %0, %cst_18 {dimension_numbers = #tpu.dot_dimension_numbers<[1], [0], [0], [1], [0, 0, 1, 1], [], []>} : vector<8x32xf32>, vector<32x128xf32>, vector<8x128xf32> -> vector<8x128xf32>
    %106 = arith.addf %104, %105 : vector<8x128xf32>
    %107 = arith.mulf %106, %31 : vector<8x128xf32>
    %108 = math.tanh %107 : vector<8x128xf32>
    %109 = arith.mulf %108, %34 : vector<8x128xf32>
    %110 = arith.addf %109, %37 : vector<8x128xf32>
    %111 = vector.extract_strided_slice %110 {offsets = [0, 0], sizes = [8, 32], strides = [1, 1]} : vector<8x128xf32> to vector<8x32xf32>
    %112 = vector.extract_strided_slice %110 {offsets = [0, 32], sizes = [8, 32], strides = [1, 1]} : vector<8x128xf32> to vector<8x32xf32>
    %113 = vector.extract_strided_slice %110 {offsets = [0, 64], sizes = [8, 32], strides = [1, 1]} : vector<8x128xf32> to vector<8x32xf32>
    %114 = vector.extract_strided_slice %110 {offsets = [0, 96], sizes = [8, 32], strides = [1, 1]} : vector<8x128xf32> to vector<8x32xf32>
    %115 = arith.mulf %112, %101 : vector<8x32xf32>
    %116 = arith.mulf %111, %113 : vector<8x32xf32>
    %117 = arith.addf %115, %116 : vector<8x32xf32>
    %118 = math.tanh %117 : vector<8x32xf32>
    %119 = arith.mulf %114, %118 : vector<8x32xf32>
    %120 = vector.extract_strided_slice %22 {offsets = [40, 0], sizes = [8, 128], strides = [1, 1]} : vector<64x128xf32> to vector<8x128xf32>
    %cst_19 = arith.constant dense<0.000000e+00> : vector<8x128xf32>
    %121 = tpu.matmul %119, %0, %cst_19 {dimension_numbers = #tpu.dot_dimension_numbers<[1], [0], [0], [1], [0, 0, 1, 1], [], []>} : vector<8x32xf32>, vector<32x128xf32>, vector<8x128xf32> -> vector<8x128xf32>
    %122 = arith.addf %120, %121 : vector<8x128xf32>
    %123 = arith.mulf %122, %31 : vector<8x128xf32>
    %124 = math.tanh %123 : vector<8x128xf32>
    %125 = arith.mulf %124, %34 : vector<8x128xf32>
    %126 = arith.addf %125, %37 : vector<8x128xf32>
    %127 = vector.extract_strided_slice %126 {offsets = [0, 0], sizes = [8, 32], strides = [1, 1]} : vector<8x128xf32> to vector<8x32xf32>
    %128 = vector.extract_strided_slice %126 {offsets = [0, 32], sizes = [8, 32], strides = [1, 1]} : vector<8x128xf32> to vector<8x32xf32>
    %129 = vector.extract_strided_slice %126 {offsets = [0, 64], sizes = [8, 32], strides = [1, 1]} : vector<8x128xf32> to vector<8x32xf32>
    %130 = vector.extract_strided_slice %126 {offsets = [0, 96], sizes = [8, 32], strides = [1, 1]} : vector<8x128xf32> to vector<8x32xf32>
    %131 = arith.mulf %128, %117 : vector<8x32xf32>
    %132 = arith.mulf %127, %129 : vector<8x32xf32>
    %133 = arith.addf %131, %132 : vector<8x32xf32>
    %134 = math.tanh %133 : vector<8x32xf32>
    %135 = arith.mulf %130, %134 : vector<8x32xf32>
    %136 = vector.extract_strided_slice %22 {offsets = [48, 0], sizes = [8, 128], strides = [1, 1]} : vector<64x128xf32> to vector<8x128xf32>
    %cst_20 = arith.constant dense<0.000000e+00> : vector<8x128xf32>
    %137 = tpu.matmul %135, %0, %cst_20 {dimension_numbers = #tpu.dot_dimension_numbers<[1], [0], [0], [1], [0, 0, 1, 1], [], []>} : vector<8x32xf32>, vector<32x128xf32>, vector<8x128xf32> -> vector<8x128xf32>
    %138 = arith.addf %136, %137 : vector<8x128xf32>
    %139 = arith.mulf %138, %31 : vector<8x128xf32>
    %140 = math.tanh %139 : vector<8x128xf32>
    %141 = arith.mulf %140, %34 : vector<8x128xf32>
    %142 = arith.addf %141, %37 : vector<8x128xf32>
    %143 = vector.extract_strided_slice %142 {offsets = [0, 0], sizes = [8, 32], strides = [1, 1]} : vector<8x128xf32> to vector<8x32xf32>
    %144 = vector.extract_strided_slice %142 {offsets = [0, 32], sizes = [8, 32], strides = [1, 1]} : vector<8x128xf32> to vector<8x32xf32>
    %145 = vector.extract_strided_slice %142 {offsets = [0, 64], sizes = [8, 32], strides = [1, 1]} : vector<8x128xf32> to vector<8x32xf32>
    %146 = vector.extract_strided_slice %142 {offsets = [0, 96], sizes = [8, 32], strides = [1, 1]} : vector<8x128xf32> to vector<8x32xf32>
    %147 = arith.mulf %144, %133 : vector<8x32xf32>
    %148 = arith.mulf %143, %145 : vector<8x32xf32>
    %149 = arith.addf %147, %148 : vector<8x32xf32>
    %150 = math.tanh %149 : vector<8x32xf32>
    %151 = arith.mulf %146, %150 : vector<8x32xf32>
    %152 = vector.extract_strided_slice %22 {offsets = [56, 0], sizes = [8, 128], strides = [1, 1]} : vector<64x128xf32> to vector<8x128xf32>
    %cst_21 = arith.constant dense<0.000000e+00> : vector<8x128xf32>
    %153 = tpu.matmul %151, %0, %cst_21 {dimension_numbers = #tpu.dot_dimension_numbers<[1], [0], [0], [1], [0, 0, 1, 1], [], []>} : vector<8x32xf32>, vector<32x128xf32>, vector<8x128xf32> -> vector<8x128xf32>
    %154 = arith.addf %152, %153 : vector<8x128xf32>
    %155 = arith.mulf %154, %31 : vector<8x128xf32>
    %156 = math.tanh %155 : vector<8x128xf32>
    %157 = arith.mulf %156, %34 : vector<8x128xf32>
    %158 = arith.addf %157, %37 : vector<8x128xf32>
    %159 = vector.extract_strided_slice %158 {offsets = [0, 0], sizes = [8, 32], strides = [1, 1]} : vector<8x128xf32> to vector<8x32xf32>
    %160 = vector.extract_strided_slice %158 {offsets = [0, 32], sizes = [8, 32], strides = [1, 1]} : vector<8x128xf32> to vector<8x32xf32>
    %161 = vector.extract_strided_slice %158 {offsets = [0, 64], sizes = [8, 32], strides = [1, 1]} : vector<8x128xf32> to vector<8x32xf32>
    %162 = vector.extract_strided_slice %158 {offsets = [0, 96], sizes = [8, 32], strides = [1, 1]} : vector<8x128xf32> to vector<8x32xf32>
    %163 = arith.mulf %160, %149 : vector<8x32xf32>
    %164 = arith.mulf %159, %161 : vector<8x32xf32>
    %165 = arith.addf %163, %164 : vector<8x32xf32>
    %166 = math.tanh %165 : vector<8x32xf32>
    %167 = arith.mulf %162, %166 : vector<8x32xf32>
    %c0_22 = arith.constant 0 : index
    %c0_23 = arith.constant 0 : index
    %168 = vector.load %arg4[%c0_22, %c0_23] : memref<32x32xf32, #tpu.memory_space<vmem>>, vector<32x32xf32>
    %cst_24 = arith.constant dense<0.000000e+00> : vector<8x32xf32>
    %169 = tpu.matmul %167, %168, %cst_24 {dimension_numbers = #tpu.dot_dimension_numbers<[1], [0], [0], [1], [0, 0, 1, 1], [], []>} : vector<8x32xf32>, vector<32x32xf32>, vector<8x32xf32> -> vector<8x32xf32>
    %c0_25 = arith.constant 0 : index
    %c0_26 = arith.constant 0 : index
    %170 = vector.load %arg5[%c0_25, %c0_26] : memref<1x32xf32, #tpu.memory_space<vmem>>, vector<1x32xf32>
    %171 = vector.broadcast %170 : vector<1x32xf32> to vector<8x32xf32>
    %172 = arith.addf %169, %171 : vector<8x32xf32>
    %cst_27 = arith.constant 0.000000e+00 : f32
    %173 = vector.broadcast %cst_27 : f32 to vector<8x32xf32>
    %174 = arith.maximumf %172, %173 : vector<8x32xf32>
    %c0_28 = arith.constant 0 : index
    %c0_29 = arith.constant 0 : index
    %175 = vector.load %arg6[%c0_28, %c0_29] : memref<32x9xf32, #tpu.memory_space<vmem>>, vector<32x9xf32>
    %cst_30 = arith.constant dense<0.000000e+00> : vector<8x9xf32>
    %176 = tpu.matmul %174, %175, %cst_30 {dimension_numbers = #tpu.dot_dimension_numbers<[1], [0], [0], [1], [0, 0, 1, 1], [], []>} : vector<8x32xf32>, vector<32x9xf32>, vector<8x9xf32> -> vector<8x9xf32>
    %c0_31 = arith.constant 0 : index
    %c0_32 = arith.constant 0 : index
    %177 = vector.load %arg7[%c0_31, %c0_32] : memref<1x9xf32, #tpu.memory_space<vmem>>, vector<1x9xf32>
    %178 = vector.broadcast %177 : vector<1x9xf32> to vector<8x9xf32>
    %179 = arith.addf %176, %178 : vector<8x9xf32>
    %c0_33 = arith.constant 0 : index
    %c0_34 = arith.constant 0 : index
    %180 = vector.load %arg8[%c0_33, %c0_34] : memref<8x9xf32, #tpu.memory_space<vmem>>, vector<8x9xf32>
    tpu.vector_store %arg8[%c0_33, %c0_34], %179 {strides = array<i32>} : memref<8x9xf32, #tpu.memory_space<vmem>>, vector<8x9xf32>,
    return
  }
}

</mosaic_0001>

<bundles_post_ra>
// kernel: lstm_model_forward.1
= control target key start
LH: loop header
LB: loop body
LE: loop exit
PB: predicated region body
PF: predicated region fallthrough
CT: control target
= control target key end

     0   :  { %v1464_v0 = vmov 0.0|0.0   ;;  %vm1465_vm0 = vmmov 0   ;;  %v1466_v4 = vmov 0.0   ;;  %v1467_v7 = vmov 0   ;;  %s1782_s2 = inlined_call_operand.vmem [shape: f32[32,128], index: 2, kind: input, shape index: {}]   ;;  %s1783_s0 = inlined_call_operand.vmem [shape: f32[64,3], index: 0, kind: input, shape index: {}]   ;;  %s1784_s1 = inlined_call_operand.vmem [shape: f32[3,128], index: 1, kind: input, shape index: {}]   ;;  %s1785_s3 = inlined_call_operand.vmem [shape: f32[1,128], index: 3, kind: input, shape index: {}]   ;;  %s1786_s4 = inlined_call_operand.vmem [shape: f32[32,32], index: 4, kind: input, shape index: {}]   ;;  %s1787_s6 = inlined_call_operand.vmem [shape: f32[32,9], index: 6, kind: input, shape index: {}]   ;;  %s1788_s5 = inlined_call_operand.vmem [shape: f32[1,32], index: 5, kind: input, shape index: {}]   ;;  %s1789_s7 = inlined_call_operand.vmem [shape: f32[1,9], index: 7, kind: input, shape index: {}]   ;;  %s1790_s8 = inlined_call_operand.vmem [shape: f32[8,9], index: 8, kind: output, shape index: {}]  }
   0x1   :  { %1344 = vmatprep.subr.bf16.mxu0 %v1464_v0  ;;  %v29_v1 = vld [vmem:[%s1782_s2] sm:$0xff]  ;;  %v30_v2 = vld [vmem:[%s1782_s2 + $0x8] sm:$0xff]  ;;  %v31_v3 = vld [vmem:[%s1782_s2 + $0x10] sm:$0xff]  ;;  %1242 = vmatprep.mubr.msk.f32.mxu0 %vm1465_vm0, %v1466_v4  ;;  %v1468_v9 = vmov 2   ;;  %v1469_v11 = vmov 1   ;;  %v83_v12 = vlaneseq  ;;  %v1470_v32 = vmov 0.5  }
   0x2   :  { %v1530_v5 = vpack.c.bf16 %v30_v2, %v29_v1  ;;  %v32_v6 = vld [vmem:[%s1782_s2 + $0x18] sm:$0xff]  ;;  %1413 = vset.pattern.permute.xlu0 %v1467_v7  ;;  %v34_v8 = vld [vmem:[%s1783_s0] sm:$0xff]  ;;  %1415 = vset.pattern.permute.xlu1 %v1468_v9  ;;  %v35_v48 = vld [vmem:[%s1783_s0 + $0x8] sm:$0xff]  ;;  %vm220_vm4 = vcmask 261120   ;;  %vm1166_vm5 = vcmask 72704  }
   0x3   :  { %45 = vperm.xlu0 %1413, %v34_v8   ;;  %162 = vperm.xlu1 %1415, %v34_v8   ;;  %v1541_v10 = vpack.c.bf16 %v32_v6, %v31_v3  ;;  %v84_v13 = vshrl.u32 %v83_v12, 7  ;;  %v33_v15 = vld [vmem:[%s1784_s1] sm:$0x7]  ;;  %v214_v24 = vand.u32 127, %v83_v12  ;;  %s1471_s1 = smov 64  }
   0x4   :  { %1346 = vmatpush3.bf16.msra.mxu0 %v1530_v5  ;;  %1350 = vmatprep.subr.bf16.mxu1 %v1464_v0  ;;  %v1574_v22 = vld [vmem:[%s1785_s3] ss:$0 sm:$0xff]  ;;  %s1472_s3 = smov 32  }
   0x5   :  { %1347 = vmatprep.subr.bf16.mxu0 %v1464_v0  ;;  %1352 = vmatpush3.bf16.msra.mxu1 %v1530_v5  ;;  %v85_v14 = vsub.s32 0, %v84_v13  ;;  %v143_v18 = vsub.s32 1, %v84_v13  ;;  %v195_v21 = vsub.s32 2, %v84_v13  ;;  %vm215_vm1 = vcmp.ge.s32.totalorder %v214_v24, 64 }
   0x6   :  { %1353 = vmatprep.subr.bf16.mxu1 %v1464_v0  ;;  %1253 = vmatprep.mubr.msk.f32.mxu1 %vm1465_vm0, %v1466_v4  ;;  %vm216_vm2 = vcmp.lt.s32.totalorder %v214_v24, 96 }
   0x7   :  { %1414 = vset.pattern.permute.xlu0 %v1469_v11  ;;  %1417 = vset.pattern.permute.xlu1 %v1469_v11  ;;  %v1566_v17 = vrot.slane %v33_v15, %v85_v14  ;;  %v1569_v20 = vrot.slane %v33_v15, %v143_v18  ;;  %v1578_v27 = vrot.slane %v33_v15, %v195_v21  ;;  %vm217_vm3 = vmand %vm215_vm1, %vm216_vm2  ;;  %v36_v18 = vld [vmem:[%s1783_s0 + $0x10] sm:$0xff] }
   0x8   :  { %1349 = vmatpush3.bf16.msra.mxu0 %v1541_v10  ;;  %110 = vperm.xlu0 %1414, %v34_v8   ;;  %v1581_v33 = vsel %vm217_vm3, 1.0, %v1470_v32  ;;  %v1584_v39 = vsel %vm217_vm3, 0.0, %v1470_v32 }
   0x9   :  { %1355 = vmatpush3.bf16.msra.mxu1 %v1541_v10  ;;  %1356 = vmatprep.subr.bf16.mxu0 %v1464_v0 }
   0xa   :  { %1362 = vmatprep.subr.bf16.mxu1 %v1464_v0 }
   0xb   :  { %1243 = vmatmul.mubr.f32.vlgmr.msra.gmra.mrb[0].mxu0 %v1466_v4 }
   0xc   :  { %1416 = vset.pattern.permute.xlu0 %v1467_v7  ;;  %1358 = vmatpush3.bf16.msra.mxu0 %v1530_v5 }
   0xd   :  { %1359 = vmatprep.subr.bf16.mxu0 %v1464_v0  ;;  %1264 = vmatprep.mubr.msk.f32.mxu0 %vm1465_vm0, %v1466_v4 }
  0x10   :  { %1361 = vmatpush3.bf16.msra.mxu0 %v1541_v10 }
  0x11   :  { %1368 = vmatprep.subr.bf16.mxu0 %v1464_v0 }
  0x82   :  { %v46_v16 = vpop.permute.xlu0 %45  ;;  %v163_v28 = vpop.permute.xlu1 %162 }
  0x83   :  { %v87_v19 = vmul.f32 %v1566_v17, %v46_v16  ;;  %v197_v30 = vmul.f32 %v1578_v27, %v163_v28 }
  0x85   :  { %v101_v25 = vadd.f32 %v1574_v22, %v87_v19 }
  0x87   :  { %v111_v23 = vpop.permute.xlu0 %110 }
  0x88   :  { %v145_v26 = vmul.f32 %v1569_v20, %v111_v23 }
  0x8a   :  { %v153_v29 = vadd.f32 %v145_v26, %v101_v25 }
  0x8c   :  { %v205_v31 = vadd.f32 %v197_v30, %v153_v29 }
  0xde   :  { %v290_v34 = vpop.f32.mrb[0].mxu0 }
  0xdf   :  { %v294_v35 = vadd.f32 %v290_v34, %v205_v31  ;;  %v1244_v36 = vpop.f32.mrb[1].mxu0 }
  0xe1   :  { %v295_v37 = vmul.f32 %v294_v35, %v1581_v33 }
  0xe3   :  { %1432 = vtanh.f32 %v295_v37 }
  0xed   :  { %v1433_v38 = vpop.eup %1432 }
  0xee   :  { %v297_v40 = vmul.f32 %v1433_v38, %v1581_v33 }
  0xf0   :  { %v298_v41 = vadd.f32 %v297_v40, %v1584_v39 }
  0xf2   :  { %301 = vrot.lane.b32.xlu1 %v298_v41, %s1471_s1  ;;  %v299_v44 = vmul.f32 0.0, %v298_v41 }
 0x164   :  { %v302_v42 = vpop.permute.xlu1 %301 }
 0x165   :  { %v304_v43 = vmul.f32 %v302_v42, %v298_v41 }
 0x167   :  { %306 = vrot.lane.b32.xlu1 %v304_v43, %s1472_s3 }
 0x1d9   :  { %v307_v45 = vpop.permute.xlu1 %306 }
 0x1da   :  { %v309_v46 = vadd.f32 %v307_v45, %v299_v44 }
 0x1dc   :  { %1434 = vtanh.f32 %v309_v46 }
 0x1e6   :  { %v1435_v47 = vpop.eup %1434 }
 0x1e7   :  { %312 = vrot.lane.b32.xlu0 %v1435_v47, %s1471_s1 }
 0x1eb   :  { %50 = vperm.xlu0 %1416, %v35_v48  }
 0x259   :  { %v313_v49 = vpop.permute.xlu0 %312 }
 0x25a   :  { %v315_v50 = vmul.f32 %v313_v49, %v298_v41  ;;  %v37_v49 = vld [vmem:[%s1783_s0 + $0x18] sm:$0xff] }
 0x25c   :  { %317 = vrot.lane.b32.xlu1 %v315_v50, %s1472_s3 }
 0x260   :  { %114 = vperm.xlu1 %1417, %v35_v48  }
 0x264   :  { %1418 = vset.pattern.permute.xlu1 %v1468_v9 }
 0x265   :  { %166 = vperm.xlu1 %1418, %v35_v48  }
 0x269   :  { %1419 = vset.pattern.permute.xlu1 %v1469_v11 }
 0x26a   :  { %v51_v52 = vpop.permute.xlu0 %50 }
 0x26b   :  { %v88_v54 = vmul.f32 %v1566_v17, %v51_v52 }
 0x26d   :  { %v102_v56 = vadd.f32 %v1574_v22, %v88_v54 }
 0x2ce   :  { %v318_v51 = vpop.permute.xlu1 %317 }
 0x2cf   :  { %1254 = vmatmul.mubr.msk.f32.vlgmr.msra.gmra.mrb[0].mxu1 %vm220_vm4, %v318_v51 }
 0x2d0   :  { %1364 = vmatpush3.bf16.msra.mxu1 %v1530_v5  ;;  %1275 = vmatprep.mubr.msk.f32.mxu1 %vm1465_vm0, %v1466_v4 }
 0x2d1   :  { %1365 = vmatprep.subr.bf16.mxu1 %v1464_v0 }
 0x2d4   :  { %1367 = vmatpush3.bf16.msra.mxu1 %v1541_v10 }
 0x2d5   :  { %1374 = vmatprep.subr.bf16.mxu1 %v1464_v0 }
 0x2df   :  { %v115_v53 = vpop.permute.xlu1 %114 }
 0x2e0   :  { %v146_v55 = vmul.f32 %v1569_v20, %v115_v53 }
 0x2e2   :  { %v154_v59 = vadd.f32 %v146_v55, %v102_v56 }
 0x2e4   :  { %v167_v57 = vpop.permute.xlu1 %166 }
 0x2e5   :  { %v198_v58 = vmul.f32 %v1578_v27, %v167_v57 }
 0x2e7   :  { %v206_v60 = vadd.f32 %v198_v58, %v154_v59 }
 0x3a2   :  { %v387_v61 = vpop.f32.mrb[0].mxu1 }
 0x3a3   :  { %v391_v62 = vadd.f32 %v387_v61, %v206_v60  ;;  %v1255_v63 = vpop.f32.mrb[1].mxu1 }
 0x3a5   :  { %v392_v1 = vmul.f32 %v391_v62, %v1581_v33 }
 0x3a7   :  { %1436 = vtanh.f32 %v392_v1 }
 0x3b1   :  { %v1437_v2 = vpop.eup %1436 }
 0x3b2   :  { %v394_v3 = vmul.f32 %v1437_v2, %v1581_v33 }
 0x3b4   :  { %v395_v6 = vadd.f32 %v394_v3, %v1584_v39 }
 0x3b6   :  { %398 = vrot.lane.b32.xlu0 %v395_v6, %s1471_s1  ;;  %v396_v13 = vmul.f32 %v395_v6, %v309_v46 }
 0x428   :  { %v399_v8 = vpop.permute.xlu0 %398 }
 0x429   :  { %v401_v12 = vmul.f32 %v399_v8, %v395_v6 }
 0x42b   :  { %403 = vrot.lane.b32.xlu1 %v401_v12, %s1472_s3 }
 0x49d   :  { %v404_v14 = vpop.permute.xlu1 %403 }
 0x49e   :  { %v406_v15 = vadd.f32 %v404_v14, %v396_v13 }
 0x4a0   :  { %1438 = vtanh.f32 %v406_v15 }
 0x4aa   :  { %v1439_v16 = vpop.eup %1438 }
 0x4ab   :  { %409 = vrot.lane.b32.xlu0 %v1439_v16, %s1471_s1 }
 0x4af   :  { %55 = vperm.xlu0 %1416, %v36_v18  }
 0x4b3   :  { %1420 = vset.pattern.permute.xlu0 %v1468_v9 }
 0x4b4   :  { %170 = vperm.xlu0 %1420, %v36_v18  }
 0x4b8   :  { %1421 = vset.pattern.permute.xlu0 %v1467_v7 }
 0x51d   :  { %v410_v19 = vpop.permute.xlu0 %409 }
 0x51e   :  { %v412_v21 = vmul.f32 %v410_v19, %v395_v6  ;;  %v38_v19 = vld [vmem:[%s1783_s0 + $0x20] sm:$0xff] }
 0x520   :  { %414 = vrot.lane.b32.xlu1 %v412_v21, %s1472_s3 }
 0x524   :  { %118 = vperm.xlu1 %1419, %v36_v18  }
 0x52e   :  { %v56_v24 = vpop.permute.xlu0 %55 }
 0x52f   :  { %v89_v26 = vmul.f32 %v1566_v17, %v56_v24 }
 0x531   :  { %v103_v30 = vadd.f32 %v1574_v22, %v89_v26 }
 0x533   :  { %v171_v29 = vpop.permute.xlu0 %170 }
 0x534   :  { %v199_v32 = vmul.f32 %v1578_v27, %v171_v29 }
 0x592   :  { %v415_v23 = vpop.permute.xlu1 %414 }
 0x593   :  { %1265 = vmatmul.mubr.msk.f32.vlgmr.msra.gmra.mrb[2].mxu0 %vm220_vm4, %v415_v23 }
 0x594   :  { %1370 = vmatpush3.bf16.msra.mxu0 %v1530_v5  ;;  %1286 = vmatprep.mubr.msk.f32.mxu0 %vm1465_vm0, %v1466_v4 }
 0x595   :  { %1371 = vmatprep.subr.bf16.mxu0 %v1464_v0 }
 0x598   :  { %1373 = vmatpush3.bf16.msra.mxu0 %v1541_v10 }
 0x599   :  { %1380 = vmatprep.subr.bf16.mxu0 %v1464_v0 }
 0x5a3   :  { %v119_v25 = vpop.permute.xlu1 %118 }
 0x5a4   :  { %v147_v28 = vmul.f32 %v1569_v20, %v119_v25 }
 0x5a6   :  { %v155_v31 = vadd.f32 %v147_v28, %v103_v30 }
 0x5a8   :  { %v207_v34 = vadd.f32 %v199_v32, %v155_v31 }
 0x666   :  { %v484_v35 = vpop.f32.mrb[2].mxu0 }
 0x667   :  { %v488_v36 = vadd.f32 %v484_v35, %v207_v34  ;;  %v1266_v37 = vpop.f32.mrb[3].mxu0 }
 0x669   :  { %v489_v38 = vmul.f32 %v488_v36, %v1581_v33 }
 0x66b   :  { %1440 = vtanh.f32 %v489_v38 }
 0x675   :  { %v1441_v40 = vpop.eup %1440 }
 0x676   :  { %v491_v41 = vmul.f32 %v1441_v40, %v1581_v33 }
 0x678   :  { %v492_v42 = vadd.f32 %v491_v41, %v1584_v39 }
 0x67a   :  { %495 = vrot.lane.b32.xlu1 %v492_v42, %s1471_s1  ;;  %v493_v45 = vmul.f32 %v492_v42, %v406_v15 }
 0x6ec   :  { %v496_v43 = vpop.permute.xlu1 %495 }
 0x6ed   :  { %v498_v44 = vmul.f32 %v496_v43, %v492_v42 }
 0x6ef   :  { %500 = vrot.lane.b32.xlu1 %v498_v44, %s1472_s3 }
 0x761   :  { %v501_v46 = vpop.permute.xlu1 %500 }
 0x762   :  { %v503_v47 = vadd.f32 %v501_v46, %v493_v45 }
 0x764   :  { %1442 = vtanh.f32 %v503_v47 }
 0x76e   :  { %v1443_v48 = vpop.eup %1442 }
 0x76f   :  { %506 = vrot.lane.b32.xlu0 %v1443_v48, %s1471_s1 }
 0x773   :  { %60 = vperm.xlu0 %1421, %v37_v49  }
 0x7e1   :  { %v507_v50 = vpop.permute.xlu0 %506 }
 0x7e2   :  { %v509_v51 = vmul.f32 %v507_v50, %v492_v42  ;;  %v39_v50 = vld [vmem:[%s1783_s0 + $0x28] sm:$0xff] }
 0x7e4   :  { %511 = vrot.lane.b32.xlu1 %v509_v51, %s1472_s3 }
 0x7e8   :  { %122 = vperm.xlu1 %1419, %v37_v49  }
 0x7ec   :  { %1422 = vset.pattern.permute.xlu1 %v1468_v9 }
 0x7ed   :  { %174 = vperm.xlu1 %1422, %v37_v49  }
 0x7f1   :  { %1423 = vset.pattern.permute.xlu1 %v1469_v11 }
 0x7f2   :  { %v61_v53 = vpop.permute.xlu0 %60 }
 0x7f3   :  { %v90_v55 = vmul.f32 %v1566_v17, %v61_v53 }
 0x7f5   :  { %v104_v57 = vadd.f32 %v1574_v22, %v90_v55 }
 0x856   :  { %v512_v52 = vpop.permute.xlu1 %511 }
 0x857   :  { %1276 = vmatmul.mubr.msk.f32.vlgmr.msra.gmra.mrb[2].mxu1 %vm220_vm4, %v512_v52 }
 0x858   :  { %1376 = vmatpush3.bf16.msra.mxu1 %v1530_v5  ;;  %1297 = vmatprep.mubr.msk.f32.mxu1 %vm1465_vm0, %v1466_v4 }
 0x859   :  { %1377 = vmatprep.subr.bf16.mxu1 %v1464_v0 }
 0x85c   :  { %1379 = vmatpush3.bf16.msra.mxu1 %v1541_v10 }
 0x85d   :  { %1386 = vmatprep.subr.bf16.mxu1 %v1464_v0 }
 0x867   :  { %v123_v54 = vpop.permute.xlu1 %122 }
 0x868   :  { %v148_v58 = vmul.f32 %v1569_v20, %v123_v54 }
 0x86a   :  { %v156_v60 = vadd.f32 %v148_v58, %v104_v57 }
 0x86c   :  { %v175_v56 = vpop.permute.xlu1 %174 }
 0x86d   :  { %v200_v59 = vmul.f32 %v1578_v27, %v175_v56 }
 0x86f   :  { %v208_v61 = vadd.f32 %v200_v59, %v156_v60 }
 0x92a   :  { %v581_v62 = vpop.f32.mrb[2].mxu1 }
 0x92b   :  { %v585_v63 = vadd.f32 %v581_v62, %v208_v61  ;;  %v1277_v1 = vpop.f32.mrb[3].mxu1 }
 0x92d   :  { %v586_v2 = vmul.f32 %v585_v63, %v1581_v33 }
 0x92f   :  { %1444 = vtanh.f32 %v586_v2 }
 0x939   :  { %v1445_v3 = vpop.eup %1444 }
 0x93a   :  { %v588_v6 = vmul.f32 %v1445_v3, %v1581_v33 }
 0x93c   :  { %v589_v8 = vadd.f32 %v588_v6, %v1584_v39 }
 0x93e   :  { %592 = vrot.lane.b32.xlu0 %v589_v8, %s1471_s1  ;;  %v590_v14 = vmul.f32 %v589_v8, %v503_v47 }
 0x9b0   :  { %v593_v12 = vpop.permute.xlu0 %592 }
 0x9b1   :  { %v595_v13 = vmul.f32 %v593_v12, %v589_v8 }
 0x9b3   :  { %597 = vrot.lane.b32.xlu1 %v595_v13, %s1472_s3 }
 0xa25   :  { %v598_v15 = vpop.permute.xlu1 %597 }
 0xa26   :  { %v600_v16 = vadd.f32 %v598_v15, %v590_v14 }
 0xa28   :  { %1446 = vtanh.f32 %v600_v16 }
 0xa32   :  { %v1447_v18 = vpop.eup %1446 }
 0xa33   :  { %603 = vrot.lane.b32.xlu0 %v1447_v18, %s1471_s1 }
 0xa37   :  { %65 = vperm.xlu0 %1421, %v38_v19  }
 0xa3b   :  { %1424 = vset.pattern.permute.xlu0 %v1468_v9 }
 0xa3c   :  { %178 = vperm.xlu0 %1424, %v38_v19  }
 0xa40   :  { %1425 = vset.pattern.permute.xlu0 %v1467_v7 }
 0xaa5   :  { %v604_v21 = vpop.permute.xlu0 %603 }
 0xaa6   :  { %v606_v23 = vmul.f32 %v604_v21, %v589_v8 }
 0xaa8   :  { %608 = vrot.lane.b32.xlu1 %v606_v23, %s1472_s3 }
 0xaac   :  { %126 = vperm.xlu1 %1423, %v38_v19  }
 0xab6   :  { %v66_v25 = vpop.permute.xlu0 %65 }
 0xab7   :  { %v91_v28 = vmul.f32 %v1566_v17, %v66_v25 }
 0xab9   :  { %v105_v31 = vadd.f32 %v1574_v22, %v91_v28 }
 0xabb   :  { %v179_v30 = vpop.permute.xlu0 %178 }
 0xabc   :  { %v201_v34 = vmul.f32 %v1578_v27, %v179_v30 }
 0xb1a   :  { %v609_v24 = vpop.permute.xlu1 %608 }
 0xb1b   :  { %1287 = vmatmul.mubr.msk.f32.vlgmr.msra.gmra.mrb[4].mxu0 %vm220_vm4, %v609_v24 }
 0xb1c   :  { %1382 = vmatpush3.bf16.msra.mxu0 %v1530_v5  ;;  %1308 = vmatprep.mubr.msk.f32.mxu0 %vm1465_vm0, %v1466_v4 }
 0xb1d   :  { %1383 = vmatprep.subr.bf16.mxu0 %v1464_v0 }
 0xb20   :  { %1385 = vmatpush3.bf16.msra.mxu0 %v1541_v10 }
 0xb21   :  { %1392 = vmatprep.subr.bf16.mxu0 %v1464_v0 }
 0xb2b   :  { %v127_v26 = vpop.permute.xlu1 %126 }
 0xb2c   :  { %v149_v29 = vmul.f32 %v1569_v20, %v127_v26 }
 0xb2e   :  { %v157_v32 = vadd.f32 %v149_v29, %v105_v31 }
 0xb30   :  { %v209_v35 = vadd.f32 %v201_v34, %v157_v32 }
 0xbee   :  { %v678_v36 = vpop.f32.mrb[4].mxu0 }
 0xbef   :  { %v682_v37 = vadd.f32 %v678_v36, %v209_v35  ;;  %v1288_v38 = vpop.f32.mrb[5].mxu0 }
 0xbf1   :  { %v683_v40 = vmul.f32 %v682_v37, %v1581_v33 }
 0xbf3   :  { %1448 = vtanh.f32 %v683_v40 }
 0xbfd   :  { %v1449_v41 = vpop.eup %1448 }
 0xbfe   :  { %v685_v42 = vmul.f32 %v1449_v41, %v1581_v33 }
 0xc00   :  { %v686_v43 = vadd.f32 %v685_v42, %v1584_v39 }
 0xc02   :  { %689 = vrot.lane.b32.xlu1 %v686_v43, %s1471_s1  ;;  %v687_v46 = vmul.f32 %v686_v43, %v600_v16  ;;  %v40_v16 = vld [vmem:[%s1783_s0 + $0x30] sm:$0xff] }
 0xc74   :  { %v690_v44 = vpop.permute.xlu1 %689 }
 0xc75   :  { %v692_v45 = vmul.f32 %v690_v44, %v686_v43 }
 0xc77   :  { %694 = vrot.lane.b32.xlu1 %v692_v45, %s1472_s3 }
 0xce9   :  { %v695_v47 = vpop.permute.xlu1 %694 }
 0xcea   :  { %v697_v48 = vadd.f32 %v695_v47, %v687_v46  ;;  %v41_v47 = vld [vmem:[%s1783_s0 + $0x38] sm:$0xff] }
 0xcec   :  { %1450 = vtanh.f32 %v697_v48 }
 0xcf6   :  { %v1451_v49 = vpop.eup %1450 }
 0xcf7   :  { %700 = vrot.lane.b32.xlu0 %v1451_v49, %s1471_s1 }
 0xcfb   :  { %70 = vperm.xlu0 %1425, %v39_v50  }
 0xd69   :  { %v701_v51 = vpop.permute.xlu0 %700 }
 0xd6a   :  { %v703_v52 = vmul.f32 %v701_v51, %v686_v43 }
 0xd6c   :  { %705 = vrot.lane.b32.xlu1 %v703_v52, %s1472_s3 }
 0xd70   :  { %130 = vperm.xlu1 %1423, %v39_v50  }
 0xd74   :  { %1426 = vset.pattern.permute.xlu1 %v1468_v9 }
 0xd75   :  { %182 = vperm.xlu1 %1426, %v39_v50  }
 0xd79   :  { %1427 = vset.pattern.permute.xlu1 %v1469_v11 }
 0xd7a   :  { %v71_v54 = vpop.permute.xlu0 %70 }
 0xd7b   :  { %v92_v56 = vmul.f32 %v1566_v17, %v71_v54 }
 0xd7d   :  { %v106_v11 = vadd.f32 %v1574_v22, %v92_v56 }
 0xdde   :  { %v706_v53 = vpop.permute.xlu1 %705 }
 0xddf   :  { %1298 = vmatmul.mubr.msk.f32.vlgmr.msra.gmra.mrb[4].mxu1 %vm220_vm4, %v706_v53 }
 0xde0   :  { %1388 = vmatpush3.bf16.msra.mxu1 %v1530_v5  ;;  %1319 = vmatprep.mubr.msk.f32.mxu1 %vm1465_vm0, %v1466_v4 }
 0xde1   :  { %1389 = vmatprep.subr.bf16.mxu1 %v1464_v0 }
 0xde4   :  { %1391 = vmatpush3.bf16.msra.mxu1 %v1541_v10 }
 0xde5   :  { %1398 = vmatprep.subr.bf16.mxu1 %v1464_v0 }
 0xdef   :  { %v131_v55 = vpop.permute.xlu1 %130 }
 0xdf0   :  { %v150_v58 = vmul.f32 %v1569_v20, %v131_v55 }
 0xdf2   :  { %v158_v59 = vadd.f32 %v150_v58, %v106_v11 }
 0xdf4   :  { %v183_v57 = vpop.permute.xlu1 %182 }
 0xdf5   :  { %v202_v5 = vmul.f32 %v1578_v27, %v183_v57 }
 0xdf7   :  { %v210_v60 = vadd.f32 %v202_v5, %v158_v59 }
 0xeb2   :  { %v775_v61 = vpop.f32.mrb[4].mxu1 }
 0xeb3   :  { %v779_v62 = vadd.f32 %v775_v61, %v210_v60  ;;  %v1299_v63 = vpop.f32.mrb[5].mxu1 }
 0xeb5   :  { %v780_v10 = vmul.f32 %v779_v62, %v1581_v33 }
 0xeb7   :  { %1452 = vtanh.f32 %v780_v10  ;;  %v995_v10 = vld [vmem:[%s1786_s4] sm:$0xff] }
 0xec1   :  { %v1453_v1 = vpop.eup %1452 }
 0xec2   :  { %v782_v2 = vmul.f32 %v1453_v1, %v1581_v33 }
 0xec4   :  { %v783_v3 = vadd.f32 %v782_v2, %v1584_v39  ;;  %v998_v2 = vld [vmem:[%s1786_s4 + $0x18] sm:$0xff] }
 0xec6   :  { %786 = vrot.lane.b32.xlu0 %v783_v3, %s1471_s1  ;;  %v784_v12 = vmul.f32 %v783_v3, %v697_v48 }
 0xf38   :  { %v787_v6 = vpop.permute.xlu0 %786 }
 0xf39   :  { %v789_v8 = vmul.f32 %v787_v6, %v783_v3 }
 0xf3b   :  { %791 = vrot.lane.b32.xlu1 %v789_v8, %s1472_s3  ;;  %v1082_v8 = vld [vmem:[%s1787_s6] sm:$0xff] }
 0xfad   :  { %v792_v13 = vpop.permute.xlu1 %791 }
 0xfae   :  { %v794_v14 = vadd.f32 %v792_v13, %v784_v12  ;;  %v1083_v12 = vld [vmem:[%s1787_s6 + $0x8] sm:$0xff] }
 0xfaf   :  { %v1399_v13 = vpack.c.bf16 %v1083_v12, %v1082_v8 }
 0xfb0   :  { %1454 = vtanh.f32 %v794_v14 }
 0xfba   :  { %v1455_v15 = vpop.eup %1454 }
 0xfbb   :  { %797 = vrot.lane.b32.xlu0 %v1455_v15, %s1471_s1 }
 0xfbf   :  { %75 = vperm.xlu0 %1425, %v40_v16  }
 0xfc3   :  { %1428 = vset.pattern.permute.xlu0 %v1468_v9 }
 0xfc4   :  { %186 = vperm.xlu0 %1428, %v40_v16  }
 0xfc8   :  { %1429 = vset.pattern.permute.xlu0 %v1467_v7 }
0x102d   :  { %v798_v18 = vpop.permute.xlu0 %797 }
0x102e   :  { %v800_v19 = vmul.f32 %v798_v18, %v783_v3  ;;  %v1084_v18 = vld [vmem:[%s1787_s6 + $0x10] sm:$0xff] }
0x1030   :  { %802 = vrot.lane.b32.xlu1 %v800_v19, %s1472_s3  ;;  %v1085_v19 = vld [vmem:[%s1787_s6 + $0x18] sm:$0xff] }
0x1034   :  { %134 = vperm.xlu1 %1427, %v40_v16  }
0x103e   :  { %v76_v23 = vpop.permute.xlu0 %75 }
0x103f   :  { %v93_v25 = vmul.f32 %v1566_v17, %v76_v23 }
0x1041   :  { %v107_v7 = vadd.f32 %v1574_v22, %v93_v25 }
0x1043   :  { %v187_v28 = vpop.permute.xlu0 %186 }
0x1044   :  { %v203_v30 = vmul.f32 %v1578_v27, %v187_v28  ;;  %v1182_v28 = vld [vmem:[%s1789_s7] ss:$0 sm:$0xff] }
0x10a2   :  { %v803_v21 = vpop.permute.xlu1 %802 }
0x10a3   :  { %1309 = vmatmul.mubr.msk.f32.vlgmr.msra.gmra.mrb[6].mxu0 %vm220_vm4, %v803_v21  ;;  %v1402_v21 = vpack.c.bf16 %v1085_v19, %v1084_v18 }
0x10a4   :  { %1330 = vmatprep.mubr.msk.f32.mxu0 %vm1465_vm0, %v1466_v4 }
0x10b3   :  { %v135_v24 = vpop.permute.xlu1 %134 }
0x10b4   :  { %v151_v26 = vmul.f32 %v1569_v20, %v135_v24 }
0x10b6   :  { %v159_v29 = vadd.f32 %v151_v26, %v107_v7 }
0x10b8   :  { %v211_v31 = vadd.f32 %v203_v30, %v159_v29 }
0x1176   :  { %v872_v32 = vpop.f32.mrb[6].mxu0 }
0x1177   :  { %v876_v34 = vadd.f32 %v872_v32, %v211_v31  ;;  %v1310_v35 = vpop.f32.mrb[7].mxu0 }
0x1179   :  { %v877_v36 = vmul.f32 %v876_v34, %v1581_v33 }
0x117b   :  { %1456 = vtanh.f32 %v877_v36 }
0x1185   :  { %v1457_v37 = vpop.eup %1456 }
0x1186   :  { %v879_v38 = vmul.f32 %v1457_v37, %v1581_v33 }
0x1188   :  { %v880_v40 = vadd.f32 %v879_v38, %v1584_v39 }
0x118a   :  { %883 = vrot.lane.b32.xlu1 %v880_v40, %s1471_s1  ;;  %v881_v43 = vmul.f32 %v880_v40, %v794_v14 }
0x11fc   :  { %v884_v41 = vpop.permute.xlu1 %883 }
0x11fd   :  { %v886_v42 = vmul.f32 %v884_v41, %v880_v40 }
0x11ff   :  { %888 = vrot.lane.b32.xlu1 %v886_v42, %s1472_s3 }
0x1271   :  { %v889_v44 = vpop.permute.xlu1 %888 }
0x1272   :  { %v891_v45 = vadd.f32 %v889_v44, %v881_v43 }
0x1274   :  { %1458 = vtanh.f32 %v891_v45 }
0x127e   :  { %v1459_v46 = vpop.eup %1458 }
0x127f   :  { %894 = vrot.lane.b32.xlu0 %v1459_v46, %s1471_s1 }
0x1283   :  { %80 = vperm.xlu0 %1429, %v41_v47  }
0x1287   :  { %1431 = vset.pattern.permute.xlu0 %v1468_v9 }
0x12f1   :  { %v895_v48 = vpop.permute.xlu0 %894 }
0x12f2   :  { %v897_v49 = vmul.f32 %v895_v48, %v880_v40 }
0x12f4   :  { %899 = vrot.lane.b32.xlu1 %v897_v49, %s1472_s3 }
0x12f8   :  { %138 = vperm.xlu1 %1427, %v41_v47  }
0x12fc   :  { %1430 = vset.pattern.permute.xlu1 %v1468_v9 }
0x12fd   :  { %190 = vperm.xlu1 %1430, %v41_v47  }
0x1302   :  { %v81_v51 = vpop.permute.xlu0 %80 }
0x1303   :  { %v94_v53 = vmul.f32 %v1566_v17, %v81_v51 }
0x1305   :  { %v108_v55 = vadd.f32 %v1574_v22, %v94_v53 }
0x1366   :  { %v900_v50 = vpop.permute.xlu1 %899 }
0x1367   :  { %1320 = vmatmul.mubr.msk.f32.vlgmr.msra.gmra.mrb[6].mxu1 %vm220_vm4, %v900_v50 }
0x1368   :  { %1341 = vmatprep.mubr.msk.f32.mxu1 %vm1465_vm0, %v1466_v4  ;;  %1400 = vmatpush3.bf16.msra.mxu1 %v1399_v13 }
0x1369   :  { %1401 = vmatprep.subr.bf16.mxu1 %v1464_v0 }
0x136c   :  { %1403 = vmatpush3.bf16.msra.mxu1 %v1402_v21 }
0x1377   :  { %v139_v52 = vpop.permute.xlu1 %138 }
0x1378   :  { %v152_v56 = vmul.f32 %v1569_v20, %v139_v52 }
0x137a   :  { %v160_v11 = vadd.f32 %v152_v56, %v108_v55 }
0x137c   :  { %v191_v54 = vpop.permute.xlu1 %190 }
0x137d   :  { %v204_v57 = vmul.f32 %v1578_v27, %v191_v54 }
0x137f   :  { %v212_v9 = vadd.f32 %v204_v57, %v160_v11 }
0x143a   :  { %v969_v58 = vpop.f32.mrb[6].mxu1 }
0x143b   :  { %v973_v5 = vadd.f32 %v969_v58, %v212_v9  ;;  %v1321_v59 = vpop.f32.mrb[7].mxu1 }
0x143d   :  { %v974_v60 = vmul.f32 %v973_v5, %v1581_v33 }
0x143f   :  { %1460 = vtanh.f32 %v974_v60 }
0x1449   :  { %v1461_v4 = vpop.eup %1460 }
0x144a   :  { %v976_v61 = vmul.f32 %v1461_v4, %v1581_v33  ;;  %v996_v33 = vld [vmem:[%s1786_s4 + $0x8] sm:$0xff] }
0x144b   :  { %v1393_v1 = vpack.c.bf16 %v996_v33, %v995_v10 }
0x144c   :  { %v977_v17 = vadd.f32 %v976_v61, %v1584_v39  ;;  %v997_v39 = vld [vmem:[%s1786_s4 + $0x10] sm:$0xff] }
0x144d   :  { %1394 = vmatpush3.bf16.msra.mxu0 %v1393_v1  ;;  %v1396_v3 = vpack.c.bf16 %v998_v2, %v997_v39 }
0x144e   :  { %980 = vrot.lane.b32.xlu0 %v977_v17, %s1471_s1  ;;  %v978_v20 = vmul.f32 %v977_v17, %v891_v45  ;;  %1395 = vmatprep.subr.bf16.mxu0 %v1464_v0  ;;  %v1180_v0 = vld [vmem:[%s1788_s5] ss:$0 sm:$0xff] }
0x1451   :  { %1397 = vmatpush3.bf16.msra.mxu0 %v1396_v3 }
0x14c0   :  { %v981_v22 = vpop.permute.xlu0 %980 }
0x14c1   :  { %v983_v62 = vmul.f32 %v981_v22, %v977_v17 }
0x14c3   :  { %985 = vrot.lane.b32.xlu1 %v983_v62, %s1472_s3 }
0x1535   :  { %v986_v27 = vpop.permute.xlu1 %985 }
0x1536   :  { %v988_v63 = vadd.f32 %v986_v27, %v978_v20 }
0x1538   :  { %1462 = vtanh.f32 %v988_v63 }
0x1542   :  { %v1463_v6 = vpop.eup %1462 }
0x1543   :  { %991 = vrot.lane.b32.xlu0 %v1463_v6, %s1471_s1 }
0x15b5   :  { %v992_v14 = vpop.permute.xlu0 %991 }
0x15b6   :  { %v994_v15 = vmul.f32 %v992_v14, %v977_v17 }
0x15b8   :  { %1007 = vrot.lane.b32.xlu1 %v994_v15, %s1472_s3 }
0x162a   :  { %v1008_v16 = vpop.permute.xlu1 %1007 }
0x162b   :  { %1331 = vmatmul.mubr.msk.f32.vlgmr.msra.gmra.mrb[8].mxu0 %vm220_vm4, %v1008_v16 }
0x16fe   :  { %v1077_v23 = vpop.f32.mrb[8].mxu0 }
0x16ff   :  { %v1078_v24 = vadd.f32 %v1180_v0, %v1077_v23  ;;  %v1332_v25 = vpop.f32.mrb[9].mxu0 }
0x1701   :  { %v1081_v26 = vmax.f32 %v1078_v24, 0.0 }
0x1703   :  { %1342 = vmatmul.mubr.msk.f32.vlgmr.msra.gmra.mrb[8].mxu1 %vm220_vm4, %v1081_v26 }
0x17d6   :  { %v1162_v7 = vpop.f32.mrb[8].mxu1 }
0x17d7   :  { %v1163_v29 = vadd.f32 %v1182_v28, %v1162_v7  ;;  %v1343_v30 = vpop.f32.mrb[9].mxu1 }
0x17d9   :  { %1167 = vst.msk [vmem:[%s1790_s8] sm:$0xff] %vm1166_vm5, %v1163_v29 }

</bundles_post_ra>
